<compile_context>
chip_gen: v5e
topology: v5e:2x2
jax: 0.10.0
libtpu: 0.0.40
codegen_flags: <defaults>
</compile_context>

<pallas_src>
import functools

import jax
import jax.numpy as jnp
from jax import lax
from jax.experimental import pallas as pl
from jax.experimental.pallas import tpu as pltpu


def _nt_xent_kernel(q_ref, p_ref, k_ref, out_ref, *, inv_temp, mxu_dtype):
    # q_ref: (TQ, D) query rows;  p_ref: (TQ, D) their positive partners;
    # k_ref: (N, D) all rows (resident across the grid);  out_ref: (TQ, 1).
    q = q_ref[...].astype(jnp.float32)
    p = p_ref[...].astype(jnp.float32)
    k = k_ref[...].astype(jnp.float32)

    eps2 = 1e-16  # matches clamping each row norm at 1e-8
    q_scale = lax.rsqrt(jnp.maximum(jnp.sum(q * q, axis=-1, keepdims=True), eps2))
    p_scale = lax.rsqrt(jnp.maximum(jnp.sum(p * p, axis=-1, keepdims=True), eps2))
    k_scale = lax.rsqrt(jnp.maximum(jnp.sum(k * k, axis=-1, keepdims=True), eps2))

    qn = q * (q_scale * inv_temp)   # fold 1/temperature into the query operand
    pn = p * p_scale
    kn = k * k_scale

    if mxu_dtype is not None:       # optional bf16 MXU operands (v6e/v7x)
        qd = qn.astype(mxu_dtype)
        kd = kn.astype(mxu_dtype)
    else:
        qd, kd = qn, kn

    # (TQ, N) scaled-similarity slab on the MXU (contract the feature axis).
    sim = lax.dot_general(
        qd, kd,
        dimension_numbers=(((1,), (1,)), ((), ())),
        preferred_element_type=jnp.float32,
    )

    # Positive logit per row: inv_temp * <zn_i, zn_pair(i)>  (O(TQ*D), no mask).
    pos = jnp.sum(qn * pn, axis=-1, keepdims=True)

    # Row-wise logsumexp excluding the self-similarity entry.  After cosine
    # normalization sim[g, g] == inv_temp (to f32 rounding), so instead of an
    # (N, N)/(TQ, N) iota mask we subtract exp(inv_temp - m) from the exp-sum.
    m = jnp.max(sim, axis=-1, keepdims=True)            # diagonal is the row max
    sumexp = jnp.sum(jnp.exp(sim - m), axis=-1, keepdims=True) - jnp.exp(inv_temp - m)
    lse = m + jnp.log(sumexp)

    out_ref[...] = lse - pos


def nt_xent_loss(z_i, z_j, temperature, *, block_q=256, mxu_dtype=None):
    """NT-Xent loss. mxu_dtype=jnp.bfloat16 enables bf16 MXU operands (v6e/v7x)."""
    B, D = z_i.shape
    assert z_j.shape == (B, D)
    N = 2 * B
    # TODO(synk): pad the batch when B % 8 != 0 (sublane alignment / partner-block tiling).
    assert B % 8 == 0, "batch_size must be a multiple of 8"

    # Largest query-row tile that is a multiple of 8, divides B, and is <= block_q.
    tq = 8
    for cand in range(8, min(block_q, B) + 1, 8):
        if B % cand == 0:
            tq = cand
    nblk = N // tq
    shift = B // tq               # partner block of query block i is (i + shift) % nblk

    # Concatenate once in HBM so a single BlockSpec can DMA the (N, D) slab.
    z = jnp.concatenate([z_i, z_j], axis=0)

    # Explicit VMEM budget: resident keys + double-buffered row blocks + sim slab
    # temporaries, clamped to stay well inside v7x's 64 MiB physical VMEM.
    # TODO(synk): for very large N also tile the key axis with an online logsumexp.
    est = 4 * (2 * N * D + 4 * tq * D + 10 * tq * N) + (2 << 20)
    vmem_limit = int(min(max(est, 16 * 1024 * 1024), 48 * 1024 * 1024))

    kernel = functools.partial(
        _nt_xent_kernel, inv_temp=1.0 / float(temperature), mxu_dtype=mxu_dtype)

    per_row = pl.pallas_call(
        kernel,
        out_shape=jax.ShapeDtypeStruct((N, 1), jnp.float32),
        grid=(nblk,),
        in_specs=[
            pl.BlockSpec((tq, D), lambda i: (i, 0)),                   # query rows
            pl.BlockSpec((tq, D), lambda i: ((i + shift) % nblk, 0)),  # positive partners
            pl.BlockSpec((N, D), lambda i: (0, 0)),                    # all keys, resident
        ],
        out_specs=pl.BlockSpec((tq, 1), lambda i: (i, 0)),
        compiler_params=pltpu.CompilerParams(
            dimension_semantics=("parallel",),
            vmem_limit_bytes=vmem_limit,
        ),
    )(z, z, z)

    return jnp.sum(per_row) / N


def nt_xent_loss_ref(z_i, z_j, temperature):
    # Pure-JAX reference mirroring the torch module (for self-check only).
    B = z_i.shape[0]
    N = 2 * B
    z = jnp.concatenate([z_i, z_j], axis=0).astype(jnp.float32)
    zn = z / jnp.maximum(jnp.linalg.norm(z, axis=-1, keepdims=True), 1e-8)
    sim = (zn @ zn.T) / temperature
    pos = jnp.concatenate(
        [jnp.diagonal(sim, offset=B), jnp.diagonal(sim, offset=-B)], axis=0
    ).reshape(N, 1)
    eye = jnp.eye(N, dtype=bool)
    pair = jnp.roll(jnp.eye(N, dtype=bool), B, axis=1)
    mask = ~(eye | pair)
    neg = sim[mask].reshape(N, N - 2)
    logits = jnp.concatenate([pos, neg], axis=1)       # (N, N-1), label 0
    lse = jax.scipy.special.logsumexp(logits, axis=1)
    return jnp.sum(lse - logits[:, 0]) / N


if __name__ == "__main__":
    batch_size = 8          # N = 16 rows in the similarity matrix
    feat_dim = 128          # lane-aligned feature dimension
    temperature = 0.5

    key = jax.random.PRNGKey(0)
    k1, k2 = jax.random.split(key)
    z_i = jax.random.normal(k1, (batch_size, feat_dim), dtype=jnp.float32)
    z_j = jax.random.normal(k2, (batch_size, feat_dim), dtype=jnp.float32)

    loss = nt_xent_loss(z_i, z_j, temperature)
    jax.block_until_ready(loss)

    loss_ref = nt_xent_loss_ref(z_i, z_j, temperature)
    assert jnp.allclose(loss, loss_ref, rtol=1e-5, atol=1e-5), (loss, loss_ref)

    print("KERNEL_OK")
</pallas_src>

<mosaic_0001>
module attributes {stable_mosaic.version = 11 : i64} {
  func.func @_nt_xent_kernel(%arg0: i32, %arg1: memref<8x128xf32, #tpu.memory_space<vmem>>, %arg2: memref<8x128xf32, #tpu.memory_space<vmem>>, %arg3: memref<16x128xf32, #tpu.memory_space<vmem>>, %arg4: memref<8x1xf32, #tpu.memory_space<vmem>>) attributes {dimension_semantics = [#tpu.dimension_semantics<parallel>], iteration_bounds = array<i64: 2>, scalar_prefetch = 0 : i64, scratch_operands = 0 : i64, tpu.core_type = #tpu.core_type<tc>, window_params = [{transform_indices = @transform_0, window_bounds = array<i64: 8, 128>}, {transform_indices = @transform_1, window_bounds = array<i64: 8, 128>}, {pipeline_mode = #tpu.pipeline_mode<synchronous>, transform_indices = @transform_2, window_bounds = array<i64: 16, 128>}, {transform_indices = @transform_3, window_bounds = array<i64: 8, 1>}]} {
    %c0 = arith.constant 0 : index
    %c0_0 = arith.constant 0 : index
    %0 = vector.load %arg1[%c0, %c0_0] : memref<8x128xf32, #tpu.memory_space<vmem>>, vector<8x128xf32>
    %c0_1 = arith.constant 0 : index
    %c0_2 = arith.constant 0 : index
    %1 = vector.load %arg2[%c0_1, %c0_2] : memref<8x128xf32, #tpu.memory_space<vmem>>, vector<8x128xf32>
    %c0_3 = arith.constant 0 : index
    %c0_4 = arith.constant 0 : index
    %2 = vector.load %arg3[%c0_3, %c0_4] : memref<16x128xf32, #tpu.memory_space<vmem>>, vector<16x128xf32>
    %3 = arith.mulf %0, %0 : vector<8x128xf32>
    %cst = arith.constant dense<0.000000e+00> : vector<8xf32>
    %4 = vector.multi_reduction <add>, %3, %cst [1] : vector<8x128xf32> to vector<8xf32>
    %5 = vector.shape_cast %4 : vector<8xf32> to vector<8x1xf32>
    %cst_5 = arith.constant 1.000000e-16 : f32
    %6 = vector.broadcast %cst_5 : f32 to vector<8x1xf32>
    %7 = arith.maximumf %5, %6 : vector<8x1xf32>
    %8 = math.rsqrt %7 : vector<8x1xf32>
    %9 = arith.mulf %1, %1 : vector<8x128xf32>
    %cst_6 = arith.constant dense<0.000000e+00> : vector<8xf32>
    %10 = vector.multi_reduction <add>, %9, %cst_6 [1] : vector<8x128xf32> to vector<8xf32>
    %11 = vector.shape_cast %10 : vector<8xf32> to vector<8x1xf32>
    %cst_7 = arith.constant 1.000000e-16 : f32
    %12 = vector.broadcast %cst_7 : f32 to vector<8x1xf32>
    %13 = arith.maximumf %11, %12 : vector<8x1xf32>
    %14 = math.rsqrt %13 : vector<8x1xf32>
    %15 = arith.mulf %2, %2 : vector<16x128xf32>
    %cst_8 = arith.constant dense<0.000000e+00> : vector<16xf32>
    %16 = vector.multi_reduction <add>, %15, %cst_8 [1] : vector<16x128xf32> to vector<16xf32>
    %17 = vector.shape_cast %16 : vector<16xf32> to vector<16x1xf32>
    %cst_9 = arith.constant 1.000000e-16 : f32
    %18 = vector.broadcast %cst_9 : f32 to vector<16x1xf32>
    %19 = arith.maximumf %17, %18 : vector<16x1xf32>
    %20 = math.rsqrt %19 : vector<16x1xf32>
    %cst_10 = arith.constant 2.000000e+00 : f32
    %21 = vector.broadcast %cst_10 : f32 to vector<8x1xf32>
    %22 = arith.mulf %8, %21 : vector<8x1xf32>
    %23 = vector.broadcast %22 : vector<8x1xf32> to vector<8x128xf32>
    %24 = arith.mulf %0, %23 : vector<8x128xf32>
    %25 = vector.broadcast %14 : vector<8x1xf32> to vector<8x128xf32>
    %26 = arith.mulf %1, %25 : vector<8x128xf32>
    %27 = vector.broadcast %20 : vector<16x1xf32> to vector<16x128xf32>
    %28 = arith.mulf %2, %27 : vector<16x128xf32>
    %cst_11 = arith.constant dense<0.000000e+00> : vector<8x16xf32>
    %29 = tpu.matmul %24, %28, %cst_11 {dimension_numbers = #tpu.dot_dimension_numbers<[1], [1], [0], [0], [0, 0, 1, 0], [], []>} : vector<8x128xf32>, vector<16x128xf32>, vector<8x16xf32> -> vector<8x16xf32>
    %30 = arith.mulf %24, %26 : vector<8x128xf32>
    %cst_12 = arith.constant dense<0.000000e+00> : vector<8xf32>
    %31 = vector.multi_reduction <add>, %30, %cst_12 [1] : vector<8x128xf32> to vector<8xf32>
    %32 = vector.shape_cast %31 : vector<8xf32> to vector<8x1xf32>
    %cst_13 = arith.constant dense<0xFF800000> : vector<8xf32>
    %33 = vector.multi_reduction <maximumf>, %29, %cst_13 [1] : vector<8x16xf32> to vector<8xf32>
    %34 = vector.shape_cast %33 : vector<8xf32> to vector<8x1xf32>
    %35 = vector.broadcast %34 : vector<8x1xf32> to vector<8x16xf32>
    %36 = arith.subf %29, %35 : vector<8x16xf32>
    %37 = math.exp %36 : vector<8x16xf32>
    %cst_14 = arith.constant dense<0.000000e+00> : vector<8xf32>
    %38 = vector.multi_reduction <add>, %37, %cst_14 [1] : vector<8x16xf32> to vector<8xf32>
    %39 = vector.shape_cast %38 : vector<8xf32> to vector<8x1xf32>
    %cst_15 = arith.constant 2.000000e+00 : f32
    %40 = vector.broadcast %cst_15 : f32 to vector<8x1xf32>
    %41 = arith.subf %40, %34 : vector<8x1xf32>
    %42 = math.exp %41 : vector<8x1xf32>
    %43 = arith.subf %39, %42 : vector<8x1xf32>
    %44 = math.log %43 : vector<8x1xf32>
    %45 = arith.addf %34, %44 : vector<8x1xf32>
    %46 = arith.subf %45, %32 : vector<8x1xf32>
    %c0_16 = arith.constant 0 : index
    %c0_17 = arith.constant 0 : index
    %47 = vector.load %arg4[%c0_16, %c0_17] : memref<8x1xf32, #tpu.memory_space<vmem>>, vector<8x1xf32>
    tpu.vector_store %arg4[%c0_16, %c0_17], %46 {strides = array<i32>} : memref<8x1xf32, #tpu.memory_space<vmem>>, vector<8x1xf32>,
    return
  }
  func.func @transform_0(%arg0: i32) -> (i32, i32) {
    %c0_i32 = arith.constant 0 : i32
    %c0_i32_0 = arith.constant 0 : i32
    return %arg0, %c0_i32 : i32, i32
  }
  func.func @transform_1(%arg0: i32) -> (i32, i32) {
    %c1_i32 = arith.constant 1 : i32
    %0 = arith.addi %arg0, %c1_i32 : i32
    %c2_i32 = arith.constant 2 : i32
    %c0_i32 = arith.constant 0 : i32
    %1 = arith.cmpi eq, %c2_i32, %c0_i32 : i32
    %c1_i32_0 = arith.constant 1 : i32
    %2 = arith.select %1, %c1_i32_0, %c2_i32 : i32
    %3 = arith.remsi %0, %2 : i32
    %c0_i32_1 = arith.constant 0 : i32
    %4 = arith.cmpi ne, %3, %c0_i32_1 : i32
    %c0_i32_2 = arith.constant 0 : i32
    %5 = arith.cmpi slt, %3, %c0_i32_2 : i32
    %c0_i32_3 = arith.constant 0 : i32
    %6 = arith.cmpi slt, %2, %c0_i32_3 : i32
    %7 = arith.xori %5, %6 : i1
    %8 = arith.andi %7, %4 : i1
    %9 = arith.addi %3, %2 : i32
    %10 = arith.select %8, %9, %3 : i32
    %c0_i32_4 = arith.constant 0 : i32
    %c0_i32_5 = arith.constant 0 : i32
    return %10, %c0_i32_4 : i32, i32
  }
  func.func @transform_2(%arg0: i32) -> (i32, i32) {
    %c0_i32 = arith.constant 0 : i32
    %c0_i32_0 = arith.constant 0 : i32
    %c0_i32_1 = arith.constant 0 : i32
    return %c0_i32, %c0_i32_0 : i32, i32
  }
  func.func @transform_3(%arg0: i32) -> (i32, i32) {
    %c0_i32 = arith.constant 0 : i32
    %c0_i32_0 = arith.constant 0 : i32
    return %arg0, %c0_i32 : i32, i32
  }
}

</mosaic_0001>

<bundles_post_ra>
// kernel: tpu_custom_call.1
= control target key start
LH: loop header
LB: loop body
LE: loop exit
PB: predicated region body
PF: predicated region fallthrough
CT: control target
= control target key end

     0   :  { %s989_s0 = inlined_call_operand.hbm [shape: f32[16,128], index: 0, kind: input, shape index: {}]   ;;  %s990_s1 = inlined_call_operand.hbm [shape: f32[16,128], index: 1, kind: input, shape index: {}]   ;;  %s991_s2 = inlined_call_operand.hbm [shape: f32[16,128], index: 2, kind: input, shape index: {}]   ;;  %s992_s3 = inlined_call_operand.vmem [shape: f32[16,1], index: 3, kind: output, shape index: {}]  }
   0x1   :  { %993 = sst [smem:[#allocation10_spill]] %s989_s0 }
   0x2   :  { %994 = sst [smem:[#allocation11_spill]] %s991_s2 }
   0x3   :  { %8 = vsyncpa [#allocation3], 0 }
   0x4   :  { %10 = vsyncpa [#allocation3 + $0x1], 0 }
   0x5   :  { %11 = vsyncpa [#allocation5], 0 }
   0x6   :  { %13 = vsyncpa [#allocation5 + $0x1], 0  ;;  %s800_s12 = smov 0   ;;  %s802_s13 = smov 0  }
   0x7   :  { %s804_s14 = smov 0   ;;  %s806_s15 = smov 0  }
   0x8   :  { %s808_s16 = smov 0   ;;  %s810_s17 = smov 0  }
   0x9   :  { %s812_s18 = smov 0  }
   0xa LB: > { %s995_s2 = sld [smem:[#allocation11_spill]]  ;;  %s837_s22 = sadd.s32 4294967295, %s775_s18   ;;  %s775_s18 = sphi %s812_s18, %s1009_s18   ;;  %s771_s17 = sphi %s810_s17, %s1008_s17   ;;  %s767_s16 = sphi %s808_s16, %s1007_s16   ;;  %s763_s15 = sphi %s806_s15, %s1006_s15   ;;  %s759_s14 = sphi %s804_s14, %s1005_s14   ;;  %s755_s13 = sphi %s802_s13, %s1004_s13   ;;  %s751_s12 = sphi %s800_s12, %s1003_s12  }
   0xb   : > { %p507_p0 = scmp.ge.s32.totalorder %s775_s18, 1  ;;  %p40_p1 = scmp.eq.s32.totalorder %s837_s22, 0 }
   0xc   : > { %p149_p2 = scmp.lt.s32.totalorder %s775_s18, 3  ;;  %s777_s24 = smov [#allocation6]  }
   0xd   : > { %s162_s25 = sshll.u32 %s777_s24, 4  ;;  %s778_s26 = smov 128   ;;  %s163_s25 = int_to_ptr.vmem [resolvable:$true] %s162_s25 }
   0xe   : > { %p842_p3 = pnand %p507_p0, %p149_p2  ;;  %s779_s27 = smov 8  }
   0xf   : > { %s851_s28 = sadd.s32 1, %s775_s18   ;;  %s26_s30 = sadd.s32 1, %s771_s17 }
  0x10   : > { %s160_s21 = sshll.u32 %s995_s2, 4  ;;  %p532_p4 = pneg %p842_p3  ;;  %s161_s21 = int_to_ptr.hbm [resolvable:$true] %s160_s21 }
  0x11   : > { %s23_s29 = ssub.s32 %s775_s18, %s851_s28  ;;  %p33_p7 = scmp.ne.s32.totalorder %s771_s17, %s767_s16 }
  0x12   : > { %p533_p5 = pnand %p532_p4, %p40_p1  ;;  %p24_p6 = scmp.eq.s32.totalorder %s23_s29, 0 }
  0x13   : > { %p34_p8 = scmp.eq.s32.totalorder %s775_s18, 0  ;;  %p39_p9 = scmp.ne.s32.totalorder %s767_s16, %s763_s15 }
  0x14   : > { %535 = dma.hbm_to_vmem [thread:$0]  (!%p533_p5), %s161_s21, 256, %s163_s25, [#allocation5], %s778_s26, %s778_s26, %s779_s27  }
  0x15   : > { %s861_s4 = scalar_select %p24_p6, %s771_s17, %s26_s30  }
  0x16   : > { %p35_p10 = por %p34_p8, %p33_p7  ;;  %p867_p11 = por %p40_p1, %p39_p9 }
  0x17   : > { %p544_p12 = scmp.lt.s32.totalorder %s775_s18, 2  ;;  %s176_s6 = sand.u32 1, %s771_s17  }
  0x18   : > { %s510_s7 = sshll.u32 %s176_s6, 3  ;;  %s511_s8 = sshll.u32 %s775_s18, 3 }
  0x19   : > { %s998_s0 = sld [smem:[#allocation10_spill]]  ;;  %s180_s19 = scalar_lea.vmem [#allocation2], %s510_s7 }
  0x1a   : > { %s188_s20 = sshll.u32 %s180_s19, 4  ;;  %p879_p13 = pnand %p544_p12, %p35_p10  ;;  %s189_s20 = int_to_ptr.vmem [resolvable:$true] %s188_s20 }
  0x1b   : > { %s177_s24 = scalar_lea.sflag [#allocation3], %s176_s6 }
  0x1c   : > { %p653_p2 = pneg %p879_p13 }
  0x1f   : > { %s184_s11 = scalar_lea.hbm %s998_s0, %s511_s8  ;;  %s656_s30 = scalar_lea.hbm %s998_s0, 16 }
  0x20   : > { %s186_s15 = sshll.u32 %s184_s11, 4  ;;  %s187_s15 = int_to_ptr.hbm [resolvable:$true] %s186_s15 }
  0x21   : > { %s649_s25 = sshra.s32 %s187_s15, 4  ;;  %s650_s25 = int_to_ptr.hbm [resolvable:$true] %s649_s25 }
  0x22   : > { %s651_s26 = scalar_lea.hbm %s650_s25, 8  ;;  %p657_p6 = scmp.lt.s32.totalorder %s650_s25, %s998_s0 }
  0x23   : > { %p652_p0 = scmp.ne.s32.totalorder %s650_s25, %s651_s26  ;;  %p658_p7 = scmp.lt.s32.totalorder %s656_s30, %s651_s26 }
  0x25   : > { %p654_p4 = pnand %p653_p2, %p652_p0  ;;  %p659_p9 = por %p658_p7, %p657_p6 }
  0x27   : > { %p655_p5 = pneg %p654_p4 }
  0x29   : > { %p660_p10 = pnand %p659_p9, %p655_p5 }
  0x2b   : > { %663 = shalt.err (!%p660_p10)
}
  0x2c   : > { %539 = dma.hbm_to_vmem [thread:$0]  (!%p879_p13), %s187_s15, 128, %s189_s20, %s177_s24  }
  0x2d   : > { %p50_p0 = scmp.lt.s32.totalorder %s851_s28, 0  ;;  %s51_s6 = ssub.s32 0, %s851_s28 }
  0x2e   : > { %s62_s9 = sadd.s32 1, %s851_s28  ;;  %s501_s10 = smin.u32 %s51_s6, %s851_s28 }
  0x2f   : > { %p63_p2 = scmp.lt.s32.totalorder %s62_s9, 0  ;;  %s53_s11 = sand.u32 1, %s501_s10  }
  0x30   : > { %s64_s19 = ssub.s32 0, %s62_s9  ;;  %s54_s21 = ssub.s32 0, %s53_s11 }
  0x31   : > { %s504_s25 = smin.u32 %s64_s19, %s62_s9  ;;  %s1011_s21 = smov (!%p50_p0, %s54_s21), %s53_s11 }
  0x32   : > { %s66_s26 = sand.u32 1, %s504_s25   ;;  %s78_s20 = sadd.s32 1, %s759_s14 }
  0x33   : > { %p503_p13 = scmp.lt.s32.totalorder %s1011_s21, 0  ;;  %s60_s15 = sadd.s32 2, %s1011_s21 }
  0x34   : > { %s67_s24 = ssub.s32 0, %s66_s26  ;;  %p85_p4 = scmp.ne.s32.totalorder %s759_s14, %s755_s13 }
  0x35   : > { %s1013_s15 = smov (!%p503_p13, %s60_s15), %s1011_s21  ;;  %s1015_s24 = smov (!%p63_p2, %s67_s24), %s66_s26 }
  0x36   : > { %p902_p5 = por %p85_p4, %p34_p8  ;;  %p91_p6 = scmp.ne.s32.totalorder %s755_s13, %s751_s12 }
  0x37   : > { %p506_p7 = scmp.lt.s32.totalorder %s1015_s24, 0  ;;  %s73_s29 = sadd.s32 2, %s1015_s24 }
  0x38   : > { %p910_p9 = por %p91_p6, %p40_p1  ;;  %s195_s7 = sand.u32 1, %s775_s18  }
  0x39   : > { %s1017_s29 = smov (!%p506_p7, %s73_s29), %s1015_s24  ;;  %s197_s8 = sand.u32 1, %s759_s14  }
  0x3a   : > { %s75_s6 = ssub.s32 %s1013_s15, %s1017_s29  ;;  %s512_s9 = sshll.u32 %s197_s8, 3 }
  0x3b   : > { %p76_p10 = scmp.eq.s32.totalorder %s75_s6, 0  ;;  %s516_s10 = sshll.u32 %s1013_s15, 3 }
  0x3c   : > { %s199_s11 = scalar_lea.vmem [#allocation4], %s512_s9  ;;  %s216_s26 = scalar_lea.hbm %s990_s1, %s516_s10 }
  0x3d   : > { %s220_s19 = sshll.u32 %s199_s11, 4  ;;  %s218_s0 = sshll.u32 %s216_s26, 4  ;;  %s221_s19 = int_to_ptr.vmem [resolvable:$true] %s220_s19  ;;  %s219_s0 = int_to_ptr.hbm [resolvable:$true] %s218_s0 }
  0x3e   : > { %s917_s21 = scalar_select %p76_p10, %s759_s14, %s78_s20  }
  0x3f   : > { %p926_p8 = pnand %p544_p12, %p902_p5  ;;  %s196_s24 = scalar_lea.sflag [#allocation5], %s195_s7 }
  0x40   : > { %s679_s15 = sshra.s32 %s219_s0, 4  ;;  %s686_s27 = scalar_lea.hbm %s990_s1, 16  ;;  %s680_s15 = int_to_ptr.hbm [resolvable:$true] %s679_s15 }
  0x41   : > { %s681_s29 = scalar_lea.hbm %s680_s15, 8  ;;  %p683_p2 = pneg %p926_p8 }
  0x42   : > { %p682_p0 = scmp.ne.s32.totalorder %s680_s15, %s681_s29  ;;  %p687_p12 = scmp.lt.s32.totalorder %s680_s15, %s990_s1 }
  0x43   : > { %p688_p5 = scmp.lt.s32.totalorder %s686_s27, %s681_s29 }
  0x44   : > { %p684_p13 = pnand %p683_p2, %p682_p0 }
  0x45   : > { %p689_p6 = por %p688_p5, %p687_p12 }
  0x46   : > { %p685_p4 = pneg %p684_p13 }
  0x48   : > { %p690_p7 = pnand %p689_p6, %p685_p4 }
  0x4a   : > { %693 = shalt.err (!%p690_p7)
}
  0x4b   : > { %542 = dma.hbm_to_vmem [thread:$0]  (!%p926_p8), %s219_s0, 128, %s221_s19, %s196_s24  }
  0x4c   : > { %229 = sbr.rel (%p842_p3) target bundleno = 627 (0x273), region = 32  ;;  %s231_s7 = sand.u32 (!%p842_p3), 1, %s767_s16  }
  0x4d   : > { %s518_s9 = sshll.u32 (!%p842_p3), %s231_s7, 3  ;;  %s232_s10 = scalar_lea.sflag (!%p842_p3), [#allocation3], %s231_s7 }
  0x4e   : > { %s235_s11 = scalar_lea.vmem (!%p842_p3), [#allocation2], %s518_s9 }
  0x51   : > { %738 = dma.done.wait (%p867_p11), %s232_s10, 128  }
  0x52   : > { %740 = vsyncadd (%p867_p11), %s232_s10, 4294967168  ;;  %s241_s12 = sand.u32 1, %s837_s22   ;;  %s243_s2 = sand.u32 1, %s755_s13  }
  0x53   : > { %s519_s0 = sshll.u32 %s243_s2, 3  ;;  %s242_s19 = scalar_lea.sflag [#allocation5], %s241_s12 }
  0x54   : > { %s245_s23 = scalar_lea.vmem [#allocation4], %s519_s0 }
  0x55   : > { %742 = dma.done.wait (%p910_p9), %s242_s19, 128  }
  0x56   : > { %744 = vsyncadd (%p910_p9), %s242_s19, 4294967168 }
  0x57   : > { %746 = dma.done.wait (%p40_p1), [#allocation5], 256  }
  0x58   : > { %748 = vsyncadd (%p40_p1), [#allocation5], 4294967040  ;;  %v298_v0 = vld [vmem:[#allocation6 + $0x8] sm:$0xff]  ;;  %v296_v2 = vld [vmem:[%s245_s23] sm:$0xff]  ;;  %vm383_vm12 = vcmask 130048   ;;  %p291_p1 = scmp.lt.s32.totalorder %s837_s22, 1 }
  0x59   : > { %v295_v1 = vld [vmem:[%s235_s11] sm:$0xff]  ;;  %v328_v3 = vmul.f32 %v298_v0, %v298_v0  ;;  %v313_v5 = vmul.f32 %v296_v2, %v296_v2  ;;  %vm401_vm13 = vcmask 7168  }
  0x5a   : > { %v299_v4 = vmul.f32 %v295_v1, %v295_v1  ;;  %v957_v6 = vld [vmem:[#allocation6] sm:$0xff]  ;;  %s1019_s22 = smov (!%p291_p1, %s837_s22), 1 }
  0x5b   : > { %331 = vadd.xlane.f32.xlu0 %v328_v3  ;;  %314 = vadd.xlane.f32.xlu2 %v313_v5  ;;  %v327_v7 = vmul.f32 %v957_v6, %v957_v6  ;;  %s521_s5 = sshll.u32 %s1019_s22, 3 }
  0x5c   : > { %300 = vadd.xlane.f32.xlu1 %v299_v4  ;;  %s294_s26 = scalar_lea.vmem %s992_s3, %s521_s5 }
  0x63   : > { %329 = vadd.xlane.f32.xlu0 %v327_v7 }
  0xce   : > { %v332_v8 = vpop.xlane.xlu0 %331  ;;  %v315_v12 = vpop.xlane.xlu2 %314 }
  0xcf   : > { %v301_v9 = vpop.xlane.xlu1 %300  ;;  %v334_v10 = vmax.f32 %v332_v8, 1e-16  ;;  %v316_v13 = vmax.f32 %v315_v12, 1e-16 }
  0xd0   : > { %v302_v11 = vmax.f32 %v301_v9, 1e-16 }
  0xd1   : > { %605 = vrsqrt.f32 %v334_v10  ;;  %vm323_vm1 = vweird.f32 %v316_v13  ;;  %vm351_vm5 = vweird.f32 %v334_v10 }
  0xd2   : > { %607 = vrsqrt.f32 %v302_v11  ;;  %vm309_vm3 = vweird.f32 %v302_v11 }
  0xd3   : > { %609 = vrsqrt.f32 %v316_v13 }
  0xd6   : > { %v330_v14 = vpop.xlane.xlu0 %329 }
  0xd7   : > { %v606_v15 = vpop.eup %605  ;;  %v333_v16 = vmax.f32 %v330_v14, 1e-16 }
  0xd8   : > { %v608_v17 = vpop.eup %607  ;;  %v346_v18 = vmul.f32 %v606_v15, %v334_v10  ;;  %vm352_vm0 = vweird.f32 %v606_v15 }
  0xd9   : > { %v610_v19 = vpop.eup %609  ;;  %v304_v20 = vmul.f32 %v608_v17, %v302_v11  ;;  %611 = vrsqrt.f32 %v333_v16  ;;  %vm310_vm4 = vweird.f32 %v608_v17  ;;  %vm353_vm6 = vmor %vm351_vm5, %vm352_vm0  ;;  %vm341_vm10 = vweird.f32 %v333_v16 }
  0xda   : > { %v347_v21 = vmul.f32 %v606_v15, %v346_v18  ;;  %v318_v22 = vmul.f32 %v610_v19, %v316_v13  ;;  %vm324_vm2 = vweird.f32 %v610_v19  ;;  %vm311_vm8 = vmor %vm309_vm3, %vm310_vm4 }
  0xdb   : > { %v305_v23 = vmul.f32 %v608_v17, %v304_v20  ;;  %vm325_vm7 = vmor %vm323_vm1, %vm324_vm2 }
  0xdc   : > { %v348_v24 = vmul.f32 0.5, %v347_v21  ;;  %v319_v25 = vmul.f32 %v610_v19, %v318_v22 }
  0xdd   : > { %v306_v26 = vmul.f32 0.5, %v305_v23 }
  0xde   : > { %v320_v27 = vmul.f32 0.5, %v319_v25  ;;  %v349_v28 = vsub.f32 1.5, %v348_v24 }
  0xdf   : > { %v612_v29 = vpop.eup %611  ;;  %v307_v30 = vsub.f32 1.5, %v306_v26 }
  0xe0   : > { %v321_v31 = vsub.f32 1.5, %v320_v27  ;;  %v336_v32 = vmul.f32 %v612_v29, %v333_v16  ;;  %v350_v33 = vmul.f32 %v606_v15, %v349_v28  ;;  %vm342_vm9 = vweird.f32 %v612_v29 }
  0xe1   : > { %v308_v34 = vmul.f32 %v608_v17, %v307_v30  ;;  %vm343_vm11 = vmor %vm341_vm10, %vm342_vm9 }
  0xe2   : > { %v337_v35 = vmul.f32 %v612_v29, %v336_v32  ;;  %v354_v36 = vsel %vm353_vm6, %v606_v15, %v350_v33  ;;  %v322_v37 = vmul.f32 %v610_v19, %v321_v31 }
  0xe3   : > { %v359_v38 = vmul.f32 %v354_v36, %v298_v0  ;;  %v312_v39 = vsel %vm311_vm8, %v608_v17, %v308_v34 }
  0xe4   : > { %v338_v40 = vmul.f32 0.5, %v337_v35  ;;  %v326_v41 = vsel %vm325_vm7, %v610_v19, %v322_v37  ;;  %v355_v42 = vmul.f32 2.0, %v312_v39 }
  0xe5   : > { %374 = vmatpush.xpose.msra.mxu0 %v359_v38  ;;  %v357_v43 = vmul.f32 %v326_v41, %v296_v2 }
  0xe6   : > { %v339_v44 = vsub.f32 1.5, %v338_v40  ;;  %v356_v45 = vmul.f32 %v355_v42, %v295_v1 }
  0xe8   : > { %v380_v46 = vmul.f32 %v357_v43, %v356_v45  ;;  %v340_v47 = vmul.f32 %v612_v29, %v339_v44 }
  0xea   : > { %381 = vadd.xlane.f32.xlu0 %v380_v46  ;;  %v344_v48 = vsel %vm343_vm11, %v612_v29, %v340_v47 }
  0xeb   : > { %v358_v49 = vmul.f32 %v344_v48, %v957_v6 }
  0xed   : > { %375 = vmatpush.xpose.msra.mxu0 %v358_v49 }
  0xf0   : > { %376 = vmatmul.f32.vlgmr.msra.gmra.mxu0 %v356_v45 }
 0x15d   : > { %v382_v1 = vpop.xlane.xlu0 %381 }
 0x16d   : > { %v377_v50 = vpop.f32.mrf.mxu0 }
 0x16e   : > { %v384_v51 = vsel %vm383_vm12, %v377_v50, -inf }
 0x16f   : > { %385 = vmax.xlane.f32.xlu1 %v384_v51 }
 0x1e2   : > { %v386_v52 = vpop.xlane.xlu1 %385 }
 0x1e3   : > { %v387_v53 = vsub.f32 %v377_v50, %v386_v52  ;;  %v393_v57 = vsub.f32 2.0, %v386_v52 }
 0x1e5   : > { %v388_v54 = vmul.f32 1.442695, %v387_v53  ;;  %v394_v58 = vmul.f32 1.442695, %v393_v57 }
 0x1e7   : > { %613 = vpow2.f32 %v388_v54 }
 0x1e8   : > { %615 = vpow2.f32 %v394_v58 }
 0x1ed   : > { %v614_v55 = vpop.eup %613 }
 0x1ee   : > { %v390_v56 = vsel %vm383_vm12, %v614_v55, 0.0  ;;  %v616_v59 = vpop.eup %615 }
 0x1ef   : > { %391 = vadd.xlane.f32.xlu2 %v390_v56 }
 0x262   : > { %v392_v60 = vpop.xlane.xlu2 %391 }
 0x263   : > { %v396_v61 = vsub.f32 %v392_v60, %v616_v59 }
 0x265   : > { %617 = vlog2.f32 %v396_v61 }
 0x26b   : > { %v618_v62 = vpop.eup %617 }
 0x26c   : > { %v398_v63 = vmul.f32 0.6931472, %v618_v62 }
 0x26e   : > { %v399_v0 = vadd.f32 %v398_v63, %v386_v52 }
 0x270   : > { %v400_v2 = vsub.f32 %v399_v0, %v382_v1 }
 0x272   : > { %402 = vst.msk [vmem:[%s294_s26] sm:$0xff] %vm401_vm13, %v400_v2 }
 0x273 PF: > { %p16_p3 = scmp.ge.s32.totalorder %s851_s28, 4   ;;  %s1003_s12 = smov %s755_s13 }
 0x274   : > { %s1004_s13 = smov %s759_s14  ;;  %s1005_s14 = smov %s917_s21 }
 0x275   : > { %s1006_s15 = smov %s767_s16  ;;  %s1007_s16 = smov %s771_s17 }
 0x276   : > { %s1008_s17 = smov %s861_s4  ;;  %s1009_s18 = smov %s851_s28 }
 0x277   :  { %18 = sbr.rel (!%p16_p3) target bundleno = 10 (0xa), region = 89 }
 0x27c   :  { %422 = vsyncpa [#allocation3], 1 }
 0x27d   :  { %424 = vsyncpa [#allocation3 + $0x1], 1 }
 0x27e   :  { %425 = vsyncpa [#allocation5], 1 }
 0x27f   :  { %427 = vsyncpa [#allocation5 + $0x1], 1 }

</bundles_post_ra>
